<compile_context>
chip_gen: v7x
topology: tpu7x:2x2x1
jax: 0.10.0
libtpu: 0.0.40
codegen_flags: <defaults>
</compile_context>

<pallas_src>
import functools

import jax
import jax.numpy as jnp
from jax import lax
from jax.experimental import pallas as pl
from jax.experimental.pallas import tpu as pltpu


def _round_up(x, m):
    return ((x + m - 1) // m) * m


def _pick_doc_tile(Ld, max_tile=512):
    """Largest reasonable doc tile: one tile if the doc fits, else an exact
    multiple-of-8 divisor <= max_tile, else fall back to max_tile + padding."""
    if Ld <= max_tile:
        return _round_up(Ld, 8)
    for t in range(max_tile, 7, -8):
        if Ld % t == 0:
            return t
    return max_tile


def _colbert_score_kernel(q_ref, d_ref, w_ref, out_ref, qn_sc, max_sc,
                          *, doc_tile, valid_doc_len, needs_mask):
    """One (batch b, doc-tile k) grid step of ColBERT MaxSim scoring.

    q_ref  : [1, Lq, H]   query last_hidden_state block (resident across k)
    d_ref  : [1, Td, H]   doc   last_hidden_state tile
    w_ref  : [H, O]       projection weight, pre-transposed (VMEM-resident)
    out_ref: [1, 1, 128]  per-batch score broadcast across the lane dim
    qn_sc  : [Lq, O]      normalized query projection in matmul dtype (set at k == 0)
    max_sc : [Lq, 1] f32  running max over doc tokens
    """
    k = pl.program_id(1)
    eps_sq = jnp.float32(1e-24)  # torch F.normalize eps=1e-12 on the norm, squared here

    @pl.when(k == 0)
    def _():
        # Project the query block once per batch element:  [Lq, H] @ [H, O].
        qp = jnp.dot(q_ref[0], w_ref[...], preferred_element_type=jnp.float32)
        inv_q = lax.rsqrt(
            jnp.maximum(jnp.sum(qp * qp, axis=-1, keepdims=True), eps_sq))
        qn_sc[...] = (qp * inv_q).astype(qn_sc.dtype)
        max_sc[...] = jnp.full(max_sc.shape, -jnp.inf, dtype=max_sc.dtype)

    # Project + normalize this doc tile:  [Td, H] @ [H, O], f32 accumulation.
    dp = jnp.dot(d_ref[0], w_ref[...], preferred_element_type=jnp.float32)
    inv_d = lax.rsqrt(
        jnp.maximum(jnp.sum(dp * dp, axis=-1, keepdims=True), eps_sq))
    dn = (dp * inv_d).astype(qn_sc.dtype)

    # Similarity [Lq, Td] = qn @ dn^T, contraction over O=64, f32 accumulation.
    sim = lax.dot_general(
        qn_sc[...], dn, (((1,), (1,)), ((), ())),
        preferred_element_type=jnp.float32)

    if needs_mask:
        # Padded doc positions (beyond the true doc length) must not win the max.
        col = lax.broadcasted_iota(jnp.int32, sim.shape, 1) + k * doc_tile
        sim = jnp.where(col < valid_doc_len, sim, -jnp.inf)

    # Running max over doc tokens — exact MaxSim semantics across doc tiles.
    max_sc[...] = jnp.maximum(max_sc[...], jnp.max(sim, axis=1, keepdims=True))

    @pl.when(k == pl.num_programs(1) - 1)
    def _():
        score = jnp.sum(max_sc[...])                      # sum over query tokens
        out_ref[...] = jnp.broadcast_to(score, out_ref.shape).astype(out_ref.dtype)


def colbert_t5_score(qry_hidden, doc_hidden, linear_weight, *, doc_tile=None):
    """score_ir = (qn @ dn^T).max(2).values.sum(1) per query/doc pair. Returns [B]."""
    B, Lq, H = qry_hidden.shape
    Bd, Ld, Hd = doc_hidden.shape
    O, Hw = linear_weight.shape
    assert B == Bd and H == Hd and H == Hw

    if doc_tile is None:
        doc_tile = _pick_doc_tile(Ld)
    doc_tile = max(8, _round_up(doc_tile, 8))

    # Pad the doc axis only when it does not tile exactly; the kernel masks the
    # padded columns with -inf so MaxSim semantics are preserved.
    Ld_pad = _round_up(Ld, doc_tile)
    needs_mask = Ld_pad != Ld
    if needs_mask:
        doc_hidden = jnp.pad(doc_hidden, ((0, 0), (0, Ld_pad - Ld), (0, 0)))
    num_d_tiles = Ld_pad // doc_tile

    # nn.Linear weight layout is [O, H]; transpose once host-side so the kernel
    # feeds the MXU a lane-dense [H, O] RHS (no in-kernel relayout), and match
    # the activation dtype so the MXU sees a homogeneous (e.g. bf16) operand pair.
    act_dtype = qry_hidden.dtype
    w_t = jnp.transpose(linear_weight).astype(act_dtype)

    kernel = functools.partial(
        _colbert_score_kernel,
        doc_tile=doc_tile, valid_doc_len=Ld, needs_mask=needs_mask)

    out = pl.pallas_call(
        kernel,
        out_shape=jax.ShapeDtypeStruct((B, 1, 128), jnp.float32),
        grid_spec=pltpu.PrefetchScalarGridSpec(
            num_scalar_prefetch=0,
            grid=(B, num_d_tiles),
            in_specs=[
                pl.BlockSpec((1, Lq, H), lambda b, k: (b, 0, 0)),        # query block
                pl.BlockSpec((1, doc_tile, H), lambda b, k: (b, k, 0)),  # doc tile
                pl.BlockSpec((H, O), lambda b, k: (0, 0)),               # weight, resident
            ],
            out_specs=pl.BlockSpec((1, 1, 128), lambda b, k: (b, 0, 0)),
            scratch_shapes=[
                pltpu.VMEM((Lq, O), act_dtype),     # normalized query projection
                pltpu.VMEM((Lq, 1), jnp.float32),   # running max over doc tokens
            ],
        ),
        compiler_params=pltpu.CompilerParams(
            dimension_semantics=("parallel", "arbitrary"),
            vmem_limit_bytes=32 * 1024 * 1024,
        ),
    )(qry_hidden, doc_hidden, w_t)
    return out[:, 0, 0]  # [B]


def colbert_t5_score_ref(qry_hidden, doc_hidden, linear_weight):
    """Pure-JAX reference for correctness checking."""
    qp = jnp.einsum("blh,oh->blo", qry_hidden, linear_weight)
    dp = jnp.einsum("blh,oh->blo", doc_hidden, linear_weight)
    eps = 1e-12
    qn = qp / jnp.maximum(jnp.linalg.norm(qp, axis=-1, keepdims=True), eps)
    dn = dp / jnp.maximum(jnp.linalg.norm(dp, axis=-1, keepdims=True), eps)
    sim = jnp.einsum("bqo,bko->bqk", qn, dn)
    return jnp.sum(jnp.max(sim, axis=2), axis=1)


if __name__ == "__main__":
    # Small synthetic shapes consistent with the module's forward:
    #   batch B=2, query seq Lq=8, doc seq Ld=14 (non-aligned, exercises the pad/mask
    #   path), hidden H=32, projection O=64.
    # NOTE: these toy shapes are for correctness only; performance tuning should
    # use production ColBERT-T5 shapes (H=512-1024, Lq~32, Ld~180-512, B>=32).
    B, Lq, Ld, H, O = 2, 8, 14, 32, 64

    key = jax.random.PRNGKey(0)
    k_q, k_d, k_w = jax.random.split(key, 3)

    qry_hidden = jax.random.normal(k_q, (B, Lq, H), dtype=jnp.float32)
    doc_hidden = jax.random.normal(k_d, (B, Ld, H), dtype=jnp.float32)
    # nn.Linear(hidden_size, 64, bias=False).weight : [64, H]
    linear_weight = jax.random.normal(k_w, (O, H), dtype=jnp.float32) * 0.02

    # doc_tile=8 with Ld=14 exercises both the running-max accumulation across two
    # doc tiles and the -inf masking of padded doc positions in the last tile.
    scores = colbert_t5_score(qry_hidden, doc_hidden, linear_weight, doc_tile=8)
    scores = jax.block_until_ready(scores)

    ref = colbert_t5_score_ref(qry_hidden, doc_hidden, linear_weight)
    assert scores.shape == (B,)
    assert jnp.allclose(scores, ref, atol=1e-4, rtol=1e-4), (scores, ref)

    # Also sanity-check the aligned (no-pad) fast path with a single doc tile.
    scores2 = jax.block_until_ready(
        colbert_t5_score(qry_hidden, doc_hidden[:, :8], linear_weight))
    ref2 = colbert_t5_score_ref(qry_hidden, doc_hidden[:, :8], linear_weight)
    assert jnp.allclose(scores2, ref2, atol=1e-4, rtol=1e-4), (scores2, ref2)

    print("KERNEL_OK")
</pallas_src>

<mosaic_0001>
module attributes {stable_mosaic.version = 11 : i64} {
  func.func @_colbert_score_kernel(%arg0: i32, %arg1: i32, %arg2: memref<1x8x32xf32, #tpu.memory_space<vmem>>, %arg3: memref<1x8x32xf32, #tpu.memory_space<vmem>>, %arg4: memref<32x64xf32, #tpu.memory_space<vmem>>, %arg5: memref<1x1x128xf32, #tpu.memory_space<vmem>>, %arg6: memref<8x64xf32, #tpu.memory_space<vmem>>, %arg7: memref<8x1xf32, #tpu.memory_space<vmem>>) attributes {dimension_semantics = [#tpu.dimension_semantics<parallel>, #tpu.dimension_semantics<arbitrary>], iteration_bounds = array<i64: 2, 2>, scalar_prefetch = 0 : i64, scratch_operands = 2 : i64, tpu.core_type = #tpu.core_type<tc>, window_params = [{transform_indices = @transform_0, window_bounds = array<i64: 1, 8, 32>}, {transform_indices = @transform_1, window_bounds = array<i64: 1, 8, 32>}, {pipeline_mode = #tpu.pipeline_mode<synchronous>, transform_indices = @transform_2, window_bounds = array<i64: 32, 64>}, {transform_indices = @transform_3, window_bounds = array<i64: 1, 1, 128>}]} {
    %c0_i32 = arith.constant 0 : i32
    %0 = arith.cmpi eq, %arg1, %c0_i32 : i32
    %1 = arith.extui %0 : i1 to i32
    %cst = arith.constant 1.000000e-24 : f32
    %c0_i32_0 = arith.constant 0 : i32
    %2 = arith.cmpi ne, %1, %c0_i32_0 : i32
    scf.if %2 {
      %c0_18 = arith.constant 0 : index
      %c0_19 = arith.constant 0 : index
      %c0_20 = arith.constant 0 : index
      %33 = vector.load %arg2[%c0_18, %c0_19, %c0_20] : memref<1x8x32xf32, #tpu.memory_space<vmem>>, vector<1x8x32xf32>
      %34 = vector.shape_cast %33 : vector<1x8x32xf32> to vector<8x32xf32>
      %c0_21 = arith.constant 0 : index
      %c0_22 = arith.constant 0 : index
      %35 = vector.load %arg4[%c0_21, %c0_22] : memref<32x64xf32, #tpu.memory_space<vmem>>, vector<32x64xf32>
      %cst_23 = arith.constant dense<0.000000e+00> : vector<8x64xf32>
      %36 = tpu.matmul %34, %35, %cst_23 {dimension_numbers = #tpu.dot_dimension_numbers<[1], [0], [0], [1], [0, 0, 1, 1], [], []>} : vector<8x32xf32>, vector<32x64xf32>, vector<8x64xf32> -> vector<8x64xf32>
      %37 = arith.mulf %36, %36 : vector<8x64xf32>
      %cst_24 = arith.constant dense<0.000000e+00> : vector<8xf32>
      %38 = vector.multi_reduction <add>, %37, %cst_24 [1] : vector<8x64xf32> to vector<8xf32>
      %39 = vector.shape_cast %38 : vector<8xf32> to vector<8x1xf32>
      %40 = vector.broadcast %cst : f32 to vector<8x1xf32>
      %41 = arith.maximumf %39, %40 : vector<8x1xf32>
      %42 = math.rsqrt %41 : vector<8x1xf32>
      %43 = vector.broadcast %42 : vector<8x1xf32> to vector<8x64xf32>
      %44 = arith.mulf %36, %43 : vector<8x64xf32>
      %c0_25 = arith.constant 0 : index
      %c0_26 = arith.constant 0 : index
      %45 = vector.load %arg6[%c0_25, %c0_26] : memref<8x64xf32, #tpu.memory_space<vmem>>, vector<8x64xf32>
      tpu.vector_store %arg6[%c0_25, %c0_26], %44 {strides = array<i32>} : memref<8x64xf32, #tpu.memory_space<vmem>>, vector<8x64xf32>,
      %cst_27 = arith.constant 0xFF800000 : f32
      %46 = vector.broadcast %cst_27 : f32 to vector<8x1xf32>
      %c0_28 = arith.constant 0 : index
      %c0_29 = arith.constant 0 : index
      %47 = vector.load %arg7[%c0_28, %c0_29] : memref<8x1xf32, #tpu.memory_space<vmem>>, vector<8x1xf32>
      tpu.vector_store %arg7[%c0_28, %c0_29], %46 {strides = array<i32>} : memref<8x1xf32, #tpu.memory_space<vmem>>, vector<8x1xf32>,
    } else {
    }
    %c0 = arith.constant 0 : index
    %c0_1 = arith.constant 0 : index
    %c0_2 = arith.constant 0 : index
    %3 = vector.load %arg3[%c0, %c0_1, %c0_2] : memref<1x8x32xf32, #tpu.memory_space<vmem>>, vector<1x8x32xf32>
    %4 = vector.shape_cast %3 : vector<1x8x32xf32> to vector<8x32xf32>
    %c0_3 = arith.constant 0 : index
    %c0_4 = arith.constant 0 : index
    %5 = vector.load %arg4[%c0_3, %c0_4] : memref<32x64xf32, #tpu.memory_space<vmem>>, vector<32x64xf32>
    %cst_5 = arith.constant dense<0.000000e+00> : vector<8x64xf32>
    %6 = tpu.matmul %4, %5, %cst_5 {dimension_numbers = #tpu.dot_dimension_numbers<[1], [0], [0], [1], [0, 0, 1, 1], [], []>} : vector<8x32xf32>, vector<32x64xf32>, vector<8x64xf32> -> vector<8x64xf32>
    %7 = arith.mulf %6, %6 : vector<8x64xf32>
    %cst_6 = arith.constant dense<0.000000e+00> : vector<8xf32>
    %8 = vector.multi_reduction <add>, %7, %cst_6 [1] : vector<8x64xf32> to vector<8xf32>
    %9 = vector.shape_cast %8 : vector<8xf32> to vector<8x1xf32>
    %cst_7 = arith.constant 1.000000e-24 : f32
    %10 = vector.broadcast %cst_7 : f32 to vector<8x1xf32>
    %11 = arith.maximumf %9, %10 : vector<8x1xf32>
    %12 = math.rsqrt %11 : vector<8x1xf32>
    %13 = vector.broadcast %12 : vector<8x1xf32> to vector<8x64xf32>
    %14 = arith.mulf %6, %13 : vector<8x64xf32>
    %c0_8 = arith.constant 0 : index
    %c0_9 = arith.constant 0 : index
    %15 = vector.load %arg6[%c0_8, %c0_9] : memref<8x64xf32, #tpu.memory_space<vmem>>, vector<8x64xf32>
    %cst_10 = arith.constant dense<0.000000e+00> : vector<8x8xf32>
    %16 = tpu.matmul %15, %14, %cst_10 {dimension_numbers = #tpu.dot_dimension_numbers<[1], [1], [0], [0], [0, 0, 1, 0], [], []>} : vector<8x64xf32>, vector<8x64xf32>, vector<8x8xf32> -> vector<8x8xf32>
    %17 = tpu.iota {dimensions = array<i32: 1>} : vector<8x8xi32>
    %c8_i32 = arith.constant 8 : i32
    %18 = arith.muli %arg1, %c8_i32 : i32
    %19 = vector.broadcast %18 : i32 to vector<8x8xi32>
    %20 = arith.addi %17, %19 : vector<8x8xi32>
    %c14_i32 = arith.constant 14 : i32
    %21 = vector.broadcast %c14_i32 : i32 to vector<8x8xi32>
    %22 = arith.cmpi slt, %20, %21 : vector<8x8xi32>
    %cst_11 = arith.constant 0xFF800000 : f32
    %23 = vector.broadcast %cst_11 : f32 to vector<8x8xf32>
    %24 = arith.select %22, %16, %23 : vector<8x8xi1>, vector<8x8xf32>
    %c0_12 = arith.constant 0 : index
    %c0_13 = arith.constant 0 : index
    %25 = vector.load %arg7[%c0_12, %c0_13] : memref<8x1xf32, #tpu.memory_space<vmem>>, vector<8x1xf32>
    %cst_14 = arith.constant dense<0xFF800000> : vector<8xf32>
    %26 = vector.multi_reduction <maximumf>, %24, %cst_14 [1] : vector<8x8xf32> to vector<8xf32>
    %27 = vector.shape_cast %26 : vector<8xf32> to vector<8x1xf32>
    %28 = arith.maximumf %25, %27 : vector<8x1xf32>
    %c0_15 = arith.constant 0 : index
    %c0_16 = arith.constant 0 : index
    %29 = vector.load %arg7[%c0_15, %c0_16] : memref<8x1xf32, #tpu.memory_space<vmem>>, vector<8x1xf32>
    tpu.vector_store %arg7[%c0_15, %c0_16], %28 {strides = array<i32>} : memref<8x1xf32, #tpu.memory_space<vmem>>, vector<8x1xf32>,
    %c1_i32 = arith.constant 1 : i32
    %30 = arith.cmpi eq, %arg1, %c1_i32 : i32
    %31 = arith.extui %30 : i1 to i32
    %c0_i32_17 = arith.constant 0 : i32
    %32 = arith.cmpi ne, %31, %c0_i32_17 : i32
    scf.if %32 {
      %c0_18 = arith.constant 0 : index
      %c0_19 = arith.constant 0 : index
      %33 = vector.load %arg7[%c0_18, %c0_19] : memref<8x1xf32, #tpu.memory_space<vmem>>, vector<8x1xf32>
      %34 = vector.shape_cast %33 : vector<8x1xf32> to vector<1x8x1xf32>
      %cst_20 = arith.constant dense<0.000000e+00> : vector<1xf32>
      %35 = vector.multi_reduction <add>, %34, %cst_20 [1, 2] : vector<1x8x1xf32> to vector<1xf32>
      %36 = vector.shape_cast %35 : vector<1xf32> to vector<1x1x1xf32>
      %37 = vector.extract %36[0, 0, 0] : f32 from vector<1x1x1xf32>
      %38 = vector.broadcast %37 : f32 to vector<1x1x128xf32>
      %c0_21 = arith.constant 0 : index
      %c0_22 = arith.constant 0 : index
      %c0_23 = arith.constant 0 : index
      %39 = vector.load %arg5[%c0_21, %c0_22, %c0_23] : memref<1x1x128xf32, #tpu.memory_space<vmem>>, vector<1x1x128xf32>
      tpu.vector_store %arg5[%c0_21, %c0_22, %c0_23], %38 {strides = array<i32>} : memref<1x1x128xf32, #tpu.memory_space<vmem>>, vector<1x1x128xf32>,
    } else {
    }
    return
  }
  func.func @transform_0(%arg0: i32, %arg1: i32) -> (i32, i32, i32) {
    %c0_i32 = arith.constant 0 : i32
    %c0_i32_0 = arith.constant 0 : i32
    %c0_i32_1 = arith.constant 0 : i32
    return %arg0, %c0_i32, %c0_i32_0 : i32, i32, i32
  }
  func.func @transform_1(%arg0: i32, %arg1: i32) -> (i32, i32, i32) {
    %c0_i32 = arith.constant 0 : i32
    %c0_i32_0 = arith.constant 0 : i32
    return %arg0, %arg1, %c0_i32 : i32, i32, i32
  }
  func.func @transform_2(%arg0: i32, %arg1: i32) -> (i32, i32) {
    %c0_i32 = arith.constant 0 : i32
    %c0_i32_0 = arith.constant 0 : i32
    %c0_i32_1 = arith.constant 0 : i32
    return %c0_i32, %c0_i32_0 : i32, i32
  }
  func.func @transform_3(%arg0: i32, %arg1: i32) -> (i32, i32, i32) {
    %c0_i32 = arith.constant 0 : i32
    %c0_i32_0 = arith.constant 0 : i32
    %c0_i32_1 = arith.constant 0 : i32
    return %arg0, %c0_i32, %c0_i32_0 : i32, i32, i32
  }
}

</mosaic_0001>

<bundles_post_ra>
// kernel: tpu_custom_call.1
= control target key start
LH: loop header
LB: loop body
LE: loop exit
PB: predicated region body
PF: predicated region fallthrough
CT: control target
= control target key end

     0   :  { %s1456_s0 = inlined_call_operand.hbm [shape: f32[2,8,32], index: 0, kind: input, shape index: {}]   ;;  %s1457_s1 = inlined_call_operand.hbm [shape: f32[2,16,32], index: 1, kind: input, shape index: {}]   ;;  %s1458_s2 = inlined_call_operand.hbm [shape: f32[32,64], index: 2, kind: input, shape index: {}]   ;;  %s1459_s3 = inlined_call_operand.hbm [shape: f32[2,1,128], index: 3, kind: output, shape index: {}]  }
   0x1   :  { %1475 = sst [smem:[#allocation22_spill]] %s1456_s0 }
   0x2   :  { %1476 = sst [smem:[#allocation23_spill]] %s1458_s2 }
   0x3   :  { %1477 = sst [smem:[#allocation24_spill]] %s1459_s3 }
   0x4   :  { %8 = vsyncpa [#allocation5], 0 }
   0x5   :  { %10 = vsyncpa [#allocation5 + $0x1], 0 }
   0x6   :  { %11 = vsyncpa [#allocation8], 0 }
   0x7   :  { %13 = vsyncpa [#allocation8 + $0x1], 0 }
   0x8   :  { %14 = vsyncpa [#allocation6], 0 }
   0x9   :  { %16 = vsyncpa [#allocation6 + $0x1], 0  ;;  %s1127_s12 = smov 0   ;;  %s1129_s13 = smov 0  }
   0xa   :  { %s1131_s14 = smov 0   ;;  %s1133_s15 = smov 0  }
   0xb   :  { %s1135_s16 = smov 0   ;;  %s1137_s17 = smov 0  }
   0xc   :  { %s1139_s18 = smov 0   ;;  %s1141_s19 = smov 0  }
   0xd   :  { %s1143_s20 = smov 0   ;;  %s1145_s21 = smov 0  }
   0xe   :  { %s1147_s22 = smov 0  }
   0xf LB: > { %1478 = sst [smem:[#allocation15_spill]] %s1064_s15  ;;  %s1183_s23 = sadd.s32 4294967295, %s1092_s22   ;;  %s1092_s22 = sphi %s1147_s22, %s22_s22   ;;  %s1088_s21 = sphi %s1145_s21, %s1525_s21   ;;  %s1084_s20 = sphi %s1143_s20, %s1524_s20   ;;  %s1080_s19 = sphi %s1141_s19, %s1523_s19   ;;  %s1076_s18 = sphi %s1139_s18, %s1522_s18   ;;  %s1072_s17 = sphi %s1137_s17, %s1521_s17   ;;  %s1068_s16 = sphi %s1135_s16, %s1520_s16   ;;  %s1064_s15 = sphi %s1133_s15, %s1519_s15   ;;  %s1060_s14 = sphi %s1131_s14, %s1518_s14   ;;  %s1056_s13 = sphi %s1129_s13, %s1517_s13   ;;  %s1052_s12 = sphi %s1127_s12, %s1516_s12  }
  0x10   : > { %1479 = sst [smem:[#allocation16_spill]] %s1076_s18  ;;  %p668_p0 = scmp.ge.s32.totalorder %s1092_s22, 1 }
  0x11   : > { %1480 = sst [smem:[#allocation17_spill]] %s1080_s19  ;;  %p1460_p1 = scmp.eq.s32.totalorder %s1183_s23, 0 }
  0x12   : > { %p140_p2 = scmp.lt.s32.totalorder %s1092_s22, 5  ;;  %s1094_s25 = smov [#allocation9]  }
  0x13   : > { %s152_s26 = sshll.u32 %s1094_s25, 4  ;;  %s1483_s2 = sld [smem:[#allocation23_spill]]  ;;  %s153_s26 = int_to_ptr.vmem [resolvable:$true] %s152_s26 }
  0x14   : > { %p1188_p3 = pnand %p668_p0, %p140_p2 }
  0x16   : > { %s1481_s24 = scalar_select %p1188_p3, 1, 0 }
  0x17   : > { %p753_p4 = pneg %p1188_p3 }
  0x19   : > { %p1196_p5 = pnand %p753_p4, %p1460_p1  ;;  %s874_s30 = scalar_lea.hbm %s1483_s2, 512 }
  0x1a   : > { %p875_p6 = scmp.ne.s32.totalorder %s1483_s2, %s874_s30  ;;  %p881_p10 = scmp.lt.u32.totalorder %s874_s30, %s1483_s2 }
  0x1b   : > { %p876_p7 = pneg %p1196_p5 }
  0x1d   : > { %p877_p8 = pnand %p876_p7, %p875_p6 }
  0x1f   : > { %p878_p9 = pneg %p877_p8 }
  0x21   : > { %p883_p11 = pnand %p881_p10, %p878_p9 }
  0x23   : > { %886 = shalt.err (!%p883_p11)
}
  0x24   : > { %s887_s8 = scalar_lea.vmem %s153_s26, 512  ;;  %p895_p2 = scmp.lt.s32.totalorder %s153_s26, %s153_s26 }
  0x25   : > { %p888_p12 = scmp.ne.s32.totalorder %s153_s26, %s887_s8  ;;  %p896_p4 = scmp.lt.s32.totalorder %s887_s8, %s887_s8 }
  0x27   : > { %p890_p13 = pnand %p888_p12, %p876_p7  ;;  %p897_p1 = por %p896_p4, %p895_p2 }
  0x29   : > { %p891_p0 = pneg %p890_p13 }
  0x2b   : > { %p898_p3 = pnand %p897_p1, %p891_p0 }
  0x2d   : > { %901 = shalt.err (!%p898_p3)
}
  0x2e   : > { %s1095_s9 = smov 128   ;;  %s1096_s10 = smov 8  }
  0x2f   : > { %756 = dma.hbm_to_vmem [thread:$0]  (!%p1196_p5), %s1483_s2, 512, %s153_s26, [#allocation8], %s1095_s9, %s1095_s9, %s1096_s10  }
  0x30   : > { %s667_s28 = sadd.s32 4294967294, %s1092_s22   ;;  %p48_p1 = scmp.ne.s32.totalorder %s1072_s17, %s1068_s16 }
  0x31   : > { %p1463_p3 = scmp.eq.s32.totalorder %s1092_s22, 0  ;;  %p54_p6 = scmp.ne.s32.totalorder %s1068_s16, %s1064_s15 }
  0x32   : > { %p127_p7 = scmp.eq.s32.totalorder %s1183_s23, 3  ;;  %p133_p9 = scmp.eq.s32.totalorder %s667_s28, 3 }
  0x33   : > { %p50_p8 = por %p1463_p3, %p48_p1  ;;  %p1484_p10 = scmp.eq.s32.totalorder %s1183_s23, 0 }
  0x34   : > { %p1232_p12 = por %p127_p7, %p48_p1  ;;  %p1236_p5 = por %p133_p9, %p54_p6 }
  0x35   : > { %p1228_p11 = por %p1484_p10, %p54_p6  ;;  %p1462_p13 = scmp.lt.s32.totalorder %s1092_s22, 4 }
  0x36   : > { %s1486_s27 = scalar_select %p1232_p12, 1, 0 }
  0x37   : > { %s1488_s26 = scalar_select %p1236_p5, 1, 0 }
  0x38   : > { %1487 = sst [smem:[#allocation18_spill]] %s1486_s27  ;;  %s166_s4 = sand.u32 1, %s1072_s17  }
  0x39   : > { %1489 = sst [smem:[#allocation19_spill]] %s1488_s26  ;;  %s672_s5 = sshll.u32 %s1088_s21, 7 }
  0x3a   : > { %s671_s6 = sshll.u32 %s166_s4, 3  ;;  %s1490_s0 = sld [smem:[#allocation22_spill]] }
  0x3b   : > { %s170_s10 = scalar_lea.vmem [#allocation4], %s671_s6  ;;  %p1250_p0 = pnand %p1462_p13, %p50_p8 }
  0x3c   : > { %s177_s11 = sshll.u32 %s170_s10, 4  ;;  %s167_s28 = scalar_lea.sflag [#allocation5], %s166_s4  ;;  %s1254_s11 = int_to_ptr.vmem [resolvable:$true] %s177_s11 }
  0x3d   : > { %p904_p4 = pneg %p1250_p0 }
  0x40   : > { %s1246_s9 = scalar_lea.hbm %s1490_s0, %s672_s5  ;;  %s907_s7 = scalar_lea.hbm %s1490_s0, 256 }
  0x41   : > { %s902_s29 = scalar_lea.hbm %s1246_s9, 128  ;;  %p908_p7 = scmp.lt.u32.totalorder %s1246_s9, %s1490_s0 }
  0x42   : > { %p903_p2 = scmp.ne.s32.totalorder %s1246_s9, %s902_s29  ;;  %p909_p8 = scmp.lt.u32.totalorder %s907_s7, %s902_s29 }
  0x43   : > { %p911_p10 = scmp.lt.u32.totalorder %s902_s29, %s1246_s9 }
  0x44   : > { %p905_p1 = pnand %p904_p4, %p903_p2  ;;  %p910_p9 = por %p909_p8, %p908_p7 }
  0x46   : > { %p906_p6 = pneg %p905_p1  ;;  %p912_p13 = por %p911_p10, %p910_p9 }
  0x48   : > { %p913_p3 = pnand %p912_p13, %p906_p6 }
  0x4a   : > { %916 = shalt.err (!%p913_p3)
}
  0x4b   : > { %s917_s4 = scalar_lea.vmem %s1254_s11, 128  ;;  %s1097_s5 = smov [#allocation4]  }
  0x4c   : > { %p918_p2 = scmp.ne.s32.totalorder %s1254_s11, %s917_s4  ;;  %s922_s6 = sshll.u32 %s1097_s5, 4  ;;  %s923_s6 = int_to_ptr.vmem [resolvable:$false] %s922_s6 }
  0x4d   : > { %s924_s8 = scalar_lea.vmem %s923_s6, 256  ;;  %p925_p12 = scmp.lt.s32.totalorder %s1254_s11, %s923_s6 }
  0x4e   : > { %p920_p1 = pnand %p918_p2, %p904_p4  ;;  %p926_p7 = scmp.lt.s32.totalorder %s924_s8, %s917_s4 }
  0x50   : > { %p921_p5 = pneg %p920_p1  ;;  %p927_p8 = por %p926_p7, %p925_p12 }
  0x52   : > { %p928_p9 = pnand %p927_p8, %p921_p5 }
  0x54   : > { %931 = shalt.err (!%p928_p9)
}
  0x55   : > { %760 = dma.hbm_to_vmem [thread:$0]  (!%p1250_p0), %s1246_s9, 128, %s1254_s11, %s167_s28  }
  0x56   : > { %s41_s29 = sadd.s32 1, %s1072_s17  ;;  %s31_s25 = sadd.s32 1, %s1084_s20 }
  0x57   : > { %p32_p3 = scmp.ge.s32.totalorder %s31_s25, 2  ;;  %s69_s7 = sadd.s32 1, %s1060_s14 }
  0x58   : > { %p76_p12 = scmp.ne.s32.totalorder %s1060_s14, %s1056_s13  ;;  %p82_p5 = scmp.ne.s32.totalorder %s1056_s13, %s1052_s12 }
  0x59   : > { %s1527_s25 = smov (%p32_p3, %s31_s25), 0  ;;  %s1493_s10 = sadd.s32 1, %s1088_s21 }
  0x5a   : > { %1492 = sst [smem:[#allocation20_spill]] %s1527_s25  ;;  %s1529_s10 = smov (!%p32_p3, %s1493_s10), %s1088_s21 }
  0x5b   : > { %s65_s4 = ssub.s32 %s1084_s20, %s1527_s25  ;;  %s184_s5 = sand.u32 1, %s1092_s22  }
  0x5c   : > { %p36_p13 = scmp.ge.s32.totalorder %s1529_s10, 2  ;;  %p1494_p0 = scmp.eq.s32.totalorder %s1183_s23, 0 }
  0x5d   : > { %p1497_p6 = scmp.eq.s32.totalorder %s1092_s22, 0  ;;  %s186_s12 = sand.u32 1, %s1060_s14  }
  0x5e   : > { %p1298_p4 = por %p82_p5, %p1494_p0  ;;  %s1531_s10 = smov (%p36_p13, %s1529_s10), 0 }
  0x5f   : > { %p1304_p10 = por %p76_p12, %p1497_p6  ;;  %s673_s28 = sshll.u32 %s186_s12, 3 }
  0x60   : > { %s1495_s9 = scalar_select %p1298_p4, 1, 0 }
  0x61   : > { %s674_s6 = sshll.u32 %s1088_s21, 1  ;;  %s38_s8 = ssub.s32 %s1088_s21, %s1531_s10 }
  0x62   : > { %1496 = sst [smem:[#allocation21_spill]] %s1495_s9  ;;  %p39_p2 = scmp.eq.s32.totalorder %s38_s8, 0 }
  0x63   : > { %s66_s0 = sor.u32 %s65_s4, %s38_s8  ;;  %s193_s2 = sadd.s32 %s1084_s20, %s674_s6 }
  0x64   : > { %p67_p1 = scmp.eq.s32.totalorder %s66_s0, 0  ;;  %s675_s15 = sshll.u32 %s193_s2, 7 }
  0x65   : > { %s1316_s25 = scalar_select %p39_p2, %s1072_s17, %s41_s29  }
  0x66   : > { %s1319_s26 = scalar_select %p67_p1, %s1060_s14, %s69_s7  }
  0x67   : > { %s188_s3 = scalar_lea.vmem [#allocation7], %s673_s28  ;;  %s1324_s9 = scalar_lea.hbm %s1457_s1, %s675_s15 }
  0x68   : > { %s197_s27 = sshll.u32 %s188_s3, 4  ;;  %p1499_p7 = scmp.lt.s32.totalorder %s1092_s22, 4  ;;  %s1326_s27 = int_to_ptr.vmem [resolvable:$true] %s197_s27 }
  0x69   : > { %s185_s2 = scalar_lea.sflag [#allocation8], %s184_s5  ;;  %s932_s3 = scalar_lea.hbm %s1324_s9, 128 }
  0x6a   : > { %p1332_p8 = pnand %p1499_p7, %p1304_p10  ;;  %p933_p9 = scmp.ne.s32.totalorder %s1324_s9, %s932_s3 }
  0x6b   : > { %s937_s19 = scalar_lea.hbm %s1457_s1, 512  ;;  %p938_p13 = scmp.lt.u32.totalorder %s1324_s9, %s1457_s1 }
  0x6c   : > { %p934_p3 = pneg %p1332_p8  ;;  %p939_p0 = scmp.lt.u32.totalorder %s937_s19, %s932_s3 }
  0x6d   : > { %p941_p10 = scmp.lt.u32.totalorder %s932_s3, %s1324_s9 }
  0x6e   : > { %p935_p12 = pnand %p934_p3, %p933_p9  ;;  %p940_p6 = por %p939_p0, %p938_p13 }
  0x70   : > { %p936_p5 = pneg %p935_p12  ;;  %p942_p2 = por %p941_p10, %p940_p6 }
  0x72   : > { %p943_p1 = pnand %p942_p2, %p936_p5 }
  0x74   : > { %946 = shalt.err (!%p943_p1)
}
  0x75   : > { %s947_s4 = scalar_lea.vmem %s1326_s27, 128  ;;  %s1098_s5 = smov [#allocation7]  }
  0x76   : > { %p948_p7 = scmp.ne.s32.totalorder %s1326_s27, %s947_s4  ;;  %s952_s11 = sshll.u32 %s1098_s5, 4  ;;  %s953_s11 = int_to_ptr.vmem [resolvable:$false] %s952_s11 }
  0x77   : > { %s954_s12 = scalar_lea.vmem %s953_s11, 256  ;;  %p955_p4 = scmp.lt.s32.totalorder %s1326_s27, %s953_s11 }
  0x78   : > { %p950_p9 = pnand %p948_p7, %p934_p3  ;;  %p956_p13 = scmp.lt.s32.totalorder %s954_s12, %s947_s4 }
  0x7a   : > { %p951_p12 = pneg %p950_p9  ;;  %p957_p0 = por %p956_p13, %p955_p4 }
  0x7c   : > { %p958_p6 = pnand %p957_p0, %p951_p12 }
  0x7e   : > { %961 = shalt.err (!%p958_p6)
}
  0x7f   : > { %763 = dma.hbm_to_vmem [thread:$0]  (!%p1332_p8), %s1324_s9, 128, %s1326_s27, %s185_s2  }
  0x80   : > { %p1501_p5 = scmp.ne.s32.totalorder %s1481_s24, 0 }
  0x81   : > { %s1364_s28 = sand.u32 (!%p1501_p5), 1, %s1068_s16  }
  0x82   : > { %206 = sbr.rel (%p1501_p5) target bundleno = 1525 (0x5f5), region = 32  ;;  %s677_s6 = sshll.u32 (!%p1501_p5), %s1364_s28, 3 }
  0x83   : > { %s209_s8 = scalar_lea.sflag (!%p1501_p5), [#allocation5], %s1364_s28  ;;  %s212_s3 = scalar_lea.vmem (!%p1501_p5), [#allocation4], %s677_s6 }
  0x89   : > { %1035 = dma.done.wait (%p1228_p11), %s209_s8, 128  }
  0x8a   : > { %1037 = vsyncadd (%p1228_p11), %s209_s8, 4294967168  ;;  %s1502_s27 = sld [smem:[#allocation21_spill]]  ;;  %s217_s9 = sand.u32 1, %s1183_s23  }
  0x8b   : > { %s219_s24 = sand.u32 1, %s1056_s13   ;;  %s218_s2 = scalar_lea.sflag [#allocation8], %s217_s9 }
  0x8c   : > { %s1374_s0 = sshll.u32 %s219_s24, 3 }
  0x8d   : > { %s221_s15 = scalar_lea.vmem [#allocation7], %s1374_s0 }
  0x90   : > { %p1503_p4 = scmp.ne.s32.totalorder %s1502_s27, 0 }
  0x92   : > { %1039 = dma.done.wait (%p1503_p4), %s218_s2, 128  }
  0x93   : > { %1041 = vsyncadd (%p1503_p4), %s218_s2, 4294967168  ;;  %p1504_p8 = scmp.eq.s32.totalorder %s1183_s23, 0 }
  0x95   : > { %1043 = dma.done.wait (%p1504_p8), [#allocation8], 512   ;;  %p1505_p11 = pmov %p1504_p8 }
  0x96   : > { %s251_s30 = scalar_lea.vmem [#allocation10], %s1364_s28  ;;  %s1506_s18 = sld [smem:[#allocation16_spill]] }
  0x97   : > { %1045 = vsyncadd (%p1505_p11), [#allocation8], 4294966784 }
  0x9c   : > { %p680_p3 = scmp.ne.s32.totalorder %s1506_s18, 0 }
  0x9d   : > { %v257_v0 = vld [vmem:[#allocation9] sm:$0xff] (!%p680_p3)  ;;  %v258_v1 = vld [vmem:[#allocation9 + $0x8] sm:$0xff] (!%p680_p3)  ;;  %v259_v2 = vld [vmem:[#allocation9 + $0x10] sm:$0xff] (!%p680_p3)  ;;  %v1099_v3 = vmov (!%p680_p3), 0.0|0.0   ;;  %vm1100_vm0 = vmmov (!%p680_p3), 0   ;;  %v1101_v6 = vmov (!%p680_p3), 0.0  }
  0x9e   : > { %255 = sbr.rel (%p680_p3) target bundleno = 540 (0x21c), region = 48  ;;  %729 = vmatprep.subr.bf16.mxu0 (!%p680_p3), %v1099_v3  ;;  %v730_v4 = vpack.c.bf16 (!%p680_p3), %v258_v1, %v257_v0  ;;  %v260_v5 = vld [vmem:[#allocation9 + $0x18] sm:$0xff] (!%p680_p3)  ;;  %710 = vmatprep.mubr.msk.f32.mxu0 (!%p680_p3), %vm1100_vm0, %v1101_v6  ;;  %v256_v8 = vld [vmem:[%s212_s3] sm:$0xff] (!%p680_p3)  ;;  %vm261_vm1 = vcmask (!%p680_p3), 261120   ;;  %vm336_vm2 = vcmask (!%p680_p3), 523264   ;;  %vm344_vm3 = vcmask (!%p680_p3), 7168  }
  0x9f   : > { %v733_v7 = vpack.c.bf16 (!%p680_p3), %v260_v5, %v259_v2  ;;  %v1102_v13 = vmov (!%p680_p3), -inf  }
  0xa0   : > { %731 = vmatpush3.bf16.msra.mxu0 (!%p680_p3), %v730_v4  ;;  %345 = vst.msk [vmem:[#allocation3] sm:$0xff] (!%p680_p3), %vm344_vm3, %v1102_v13 }
  0xa1   : > { %732 = vmatprep.subr.bf16.mxu0 (!%p680_p3), %v1099_v3 }
  0xa4   : > { %734 = vmatpush3.bf16.msra.mxu0 (!%p680_p3), %v733_v7 }
  0xa7   : > { %711 = vmatmul.mubr.msk.f32.vlgmr.msra.gmra.mrb[0].mxu0 %vm261_vm1, %v256_v8 }
 0x17a   : > { %v331_v9 = vpop.f32.mrb[0].mxu0 }
 0x17b   : > { %v712_v10 = vpop.f32.mrb[1].mxu0  ;;  %v335_v11 = vmul.f32 %v331_v9, %v331_v9 }
 0x17d   : > { %v337_v12 = vsel %vm336_vm2, %v335_v11, 0.0 }
 0x17e   : > { %338 = vadd.xlane.f32.xlu0 %v337_v12 }
 0x20b   : > { %v339_v14 = vpop.xlane.xlu0 %338 }
 0x20c   : > { %v340_v15 = vmax.f32 %v339_v14, 1e-24 }
 0x20e   : > { %870 = vrsqrt.f32 %v340_v15 }
 0x218   : > { %v871_v16 = vpop.eup %870 }
 0x219   : > { %v342_v17 = vmul.f32 %v871_v16, %v331_v9 }
 0x21b   : > { %343 = vst.msk [vmem:[#allocation2] sm:$0xff] %vm336_vm2, %v342_v17 }
 0x21c PF: > { %v347_v18 = vld [vmem:[#allocation9] sm:$0xff]  ;;  %v348_v19 = vld [vmem:[#allocation9 + $0x8] sm:$0xff]  ;;  %v349_v20 = vld [vmem:[#allocation9 + $0x10] sm:$0xff]  ;;  %v1103_v21 = vmov 0.0|0.0   ;;  %vm1104_vm4 = vmmov 0   ;;  %v1105_v24 = vmov 0.0   ;;  %v510_v36 = vlaneseq }
 0x21d   : > { %735 = vmatprep.subr.bf16.mxu0 %v1103_v21  ;;  %v736_v22 = vpack.c.bf16 %v348_v19, %v347_v18  ;;  %v350_v23 = vld [vmem:[#allocation9 + $0x18] sm:$0xff]  ;;  %721 = vmatprep.mubr.msk.f32.mxu0 %vm1104_vm4, %v1105_v24  ;;  %vm351_vm5 = vcmask 261120   ;;  %s1507_s23 = sld [smem:[#allocation16_spill]]  ;;  %vm426_vm6 = vcmask 523264   ;;  %vm518_vm8 = vcmask 64512  }
 0x21e   : > { %724 = vmatprep.subr.mxu1 %v1105_v24  ;;  %726 = vmatprep.mubr.msk.f32.mxu1 %vm1104_vm4, %v1105_v24  ;;  %v739_v25 = vpack.c.bf16 %v350_v23, %v349_v20  ;;  %v346_v26 = vld [vmem:[%s221_s15] sm:$0xff]  ;;  %v511_v37 = vand.u32 127, %v510_v36  ;;  %vm523_vm9 = vcmask 7168  }
 0x21f   : > { %737 = vmatpush3.bf16.msra.mxu0 %v736_v22  ;;  %v517_v44 = vld [vmem:[#allocation3] sm:$0xff] }
 0x220   : > { %738 = vmatprep.subr.bf16.mxu0 %v1103_v21 }
 0x222   : > { %v433_v35 = vld [vmem:[#allocation2] sm:$0xff] }
 0x223   : > { %740 = vmatpush3.bf16.msra.mxu0 %v739_v25  ;;  %s685_s19 = sshll.u32 %s1507_s23, 3  ;;  %p686_p10 = scmp.ne.s32.totalorder %s1507_s23, 1 }
 0x224   : > { %v513_v38 = vstv %s685_s19 }
 0x225   : > { %v514_v39 = vadd.s32 %v513_v38, %v511_v37 }
 0x226   : > { %722 = vmatmul.mubr.msk.f32.vlgmr.msra.gmra.mrb[0].mxu0 %vm351_vm5, %v346_v26 }
 0x227   : > { %vm515_vm7 = vcmp.lt.s32.totalorder %v514_v39, 14 }
 0x2f9   : > { %v421_v27 = vpop.f32.mrb[0].mxu0 }
 0x2fa   : > { %v723_v28 = vpop.f32.mrb[1].mxu0  ;;  %v425_v29 = vmul.f32 %v421_v27, %v421_v27 }
 0x2fc   : > { %v427_v30 = vsel %vm426_vm6, %v425_v29, 0.0 }
 0x2fd   : > { %428 = vadd.xlane.f32.xlu0 %v427_v30 }
 0x38a   : > { %v429_v31 = vpop.xlane.xlu0 %428 }
 0x38b   : > { %v430_v32 = vmax.f32 %v429_v31, 1e-24 }
 0x38d   : > { %872 = vrsqrt.f32 %v430_v32 }
 0x397   : > { %v873_v33 = vpop.eup %872 }
 0x398   : > { %v432_v34 = vmul.f32 %v873_v33, %v421_v27 }
 0x39a   : > { %725 = vmatpush3.xpose.msk.msra.mxu1 %vm426_vm6, %v432_v34 }
 0x39d   : > { %727 = vmatmul.mubr.msk.f32.vlgmr.msra.gmra.mrb[0].mxu1 %vm426_vm6, %v433_v35 }
 0x470   : > { %v506_v40 = vpop.f32.mrb[0].mxu1 }
 0x471   : > { %v516_v41 = vsel %vm515_vm7, %v506_v40, -inf  ;;  %v728_v42 = vpop.f32.mrb[1].mxu1 }
 0x472   : > { %v519_v43 = vsel %vm518_vm8, %v516_v41, -inf }
 0x473   : > { %520 = vmax.xlane.f32.xlu0 %v519_v43 }
 0x4fd   : > { %528 = sbr.rel (%p686_p10) target bundleno = 1498 (0x5da), region = 52 }
 0x500   : > { %v521_v45 = vpop.xlane.xlu0 %520 }
 0x501   : > { %v522_v46 = vmax.f32 %v517_v44, %v521_v45 }
 0x503   : > { %524 = vst.msk [vmem:[#allocation3] sm:$0xff] %vm523_vm9, %v522_v46 }
 0x50a   : > { %v529_v47 = vld [vmem:[#allocation3] sm:$0xff] }
 0x50b   : > { %v530_v48 = vsel %vm523_vm9, %v529_v47, 0.0 }
 0x50c   : > { %531 = vadd.xlane.f32.xlu0 %v530_v48 }
 0x599   : > { %v532_v49 = vpop.xlane.xlu0 %531 }
 0x59a   : > { %v533_v50 = vrot.slane %v532_v49, 4 }
 0x59c   : > { %v534_v51 = vadd.f32 %v533_v50, %v532_v49 }
 0x59e   : > { %v535_v52 = vrot.slane %v534_v51, 2 }
 0x5a0   : > { %v536_v53 = vadd.f32 %v535_v52, %v534_v51 }
 0x5a2   : > { %v537_v54 = vrot.slane %v536_v53, 1 }
 0x5a4   : > { %v538_v55 = vadd.f32 %v537_v54, %v536_v53 }
 0x5a6   : > { %741 = vpush %v538_v55 }
 0x5d7   : > { %s742_s29 = spop %741 }
 0x5d8   : > { %v540_v56 = vstv %s742_s29 }
 0x5d9   : > { %541 = vst [vmem:[%s251_s30] sm:$0x1] %v540_v56 }
 0x5da PF: > { %s1508_s7 = sld [smem:[#allocation17_spill]]  ;;  %s1509_s4 = sld [smem:[#allocation18_spill]] }
 0x5db   : > { %s1510_s6 = sld [smem:[#allocation24_spill]]  ;;  %s555_s3 = sshll.u32 %s251_s30, 4  ;;  %s556_s3 = int_to_ptr.vmem [resolvable:$true] %s555_s3 }
 0x5dc   : > { %s543_s27 = scalar_lea.sflag [#allocation6], %s1364_s28  ;;  %s962_s9 = scalar_lea.vmem %s556_s3, 16 }
 0x5dd   : > { %p963_p2 = scmp.ne.s32.totalorder %s556_s3, %s962_s9  ;;  %s1106_s24 = smov [#allocation10]  }
 0x5de   : > { %s966_s0 = sshll.u32 %s1106_s24, 4  ;;  %s967_s0 = int_to_ptr.vmem [resolvable:$false] %s966_s0 }
 0x5df   : > { %s968_s2 = scalar_lea.vmem %s967_s0, 32  ;;  %p969_p12 = scmp.lt.s32.totalorder %s556_s3, %s967_s0 }
 0x5e0   : > { %s687_s5 = sshll.u32 %s1508_s7, 4  ;;  %p1511_p1 = scmp.ne.s32.totalorder %s1509_s4, 0 }
 0x5e1   : > { %s1397_s8 = scalar_lea.hbm %s1510_s6, %s687_s5  ;;  %p970_p13 = scmp.lt.s32.totalorder %s968_s2, %s962_s9 }
 0x5e2   : > { %p964_p7 = pnand %p963_p2, %p1511_p1 }
 0x5e3   : > { %p971_p0 = por %p970_p13, %p969_p12 }
 0x5e4   : > { %p965_p9 = pneg %p964_p7 }
 0x5e6   : > { %p972_p6 = pnand %p971_p0, %p965_p9 }
 0x5e8   : > { %975 = shalt.err (!%p972_p6)
}
 0x5e9   : > { %s976_s28 = scalar_lea.hbm %s1397_s8, 16  ;;  %s980_s18 = scalar_lea.hbm %s1510_s6, 32 }
 0x5ea   : > { %p977_p5 = scmp.ne.s32.totalorder %s1397_s8, %s976_s28  ;;  %p981_p11 = scmp.lt.u32.totalorder %s1397_s8, %s1510_s6 }
 0x5eb   : > { %p982_p3 = scmp.lt.u32.totalorder %s980_s18, %s976_s28  ;;  %p984_p2 = scmp.lt.u32.totalorder %s976_s28, %s1397_s8 }
 0x5ec   : > { %p978_p4 = pnand %p977_p5, %p1511_p1 }
 0x5ed   : > { %p983_p10 = por %p982_p3, %p981_p11 }
 0x5ee   : > { %p979_p8 = pneg %p978_p4 }
 0x5ef   : > { %p985_p7 = por %p984_p2, %p983_p10 }
 0x5f1   : > { %p986_p9 = pnand %p985_p7, %p979_p8 }
 0x5f3   : > { %989 = shalt.err (!%p986_p9)
}
 0x5f4   : > { %751 = dma.vmem_to_hbm [thread:$0]  (%p1511_p1), %s556_s3, 16, %s1397_s8, %s543_s27  }
 0x5f5 PF: > { %s1512_s29 = sld [smem:[#allocation15_spill]]  ;;  %s1513_s7 = sld [smem:[#allocation19_spill]] }
 0x5f6   : > { %p771_p12 = scmp.ge.s32.totalorder %s1092_s22, 2 }
 0x5fb   : > { %s567_s5 = sand.u32 1, %s1512_s29   ;;  %p1514_p13 = scmp.ne.s32.totalorder %s1513_s7, 0 }
 0x5fc   : > { %s568_s11 = scalar_lea.sflag [#allocation6], %s567_s5 }
 0x5fd   : > { %p765_p0 = pnand %p771_p12, %p1514_p13 }
 0x5ff   : > { %1047 = dma.done.wait (!%p765_p0), %s568_s11, 16  }
 0x600   : > { %1049 = vsyncadd (!%p765_p0), %s568_s11, 4294967280  ;;  %s22_s22 = sadd.s32 1, %s1092_s22   ;;  %s1515_s4 = sld [smem:[#allocation20_spill]] }
 0x601   : > { %p19_p6 = scmp.ge.s32.totalorder %s22_s22, 6   ;;  %s1516_s12 = smov %s1056_s13 }
 0x602   : > { %s1517_s13 = smov %s1060_s14  ;;  %s1518_s14 = smov %s1319_s26 }
 0x603   : > { %s1519_s15 = smov %s1068_s16  ;;  %s1520_s16 = smov %s1072_s17 }
 0x604   : > { %s1521_s17 = smov %s1316_s25  ;;  %s1522_s18 = smov %s1084_s20 }
 0x605   : > { %s1523_s19 = smov %s1088_s21  ;;  %s1525_s21 = smov %s1531_s10 }
 0x606   : > { %s1524_s20 = smov %s1515_s4  ;;  %21 = sbr.rel (!%p19_p6) target bundleno = 15 (0xf), region = 102 }
 0x60d   :  { %572 = vsyncpa [#allocation5], 1 }
 0x60e   :  { %574 = vsyncpa [#allocation5 + $0x1], 1 }
 0x60f   :  { %575 = vsyncpa [#allocation8], 1 }
 0x610   :  { %577 = vsyncpa [#allocation8 + $0x1], 1 }
 0x611   :  { %578 = vsyncpa [#allocation6], 1 }
 0x612   :  { %580 = vsyncpa [#allocation6 + $0x1], 1 }

</bundles_post_ra>
